<compile_context>
chip_gen: v7x
topology: tpu7x:2x2x1
jax: 0.10.0
libtpu: 0.0.40
codegen_flags: <defaults>
</compile_context>

<pallas_src>
import jax
import jax.numpy as jnp
import numpy as np
from jax import lax
from jax.experimental import pallas as pl
from jax.experimental.pallas import tpu as pltpu


def _round_up(x, m):
    return ((x + m - 1) // m) * m


# --------------------------------------------------------------------------- #
# Kernel
# --------------------------------------------------------------------------- #
def _luong_decoder_kernel(emb_ref, h0_ref, enc_ref,
                          w_i_ref, w_h_ref, misc_ref,
                          w_out_ref, b_out_ref,
                          out_ref, hid_ref):
    st = emb_ref.shape[0]
    H = w_h_ref.shape[0]

    # input_dropout is identity in eval mode; ReLU on the embedded tokens.
    x = jnp.maximum(emb_ref[...], 0.0)                                     # (st, E)

    misc = misc_ref[...]                                                   # (3, Gp)
    b_i = misc[0:1, :]           # packed [b_ir+b_hr | b_iz+b_hz | b_in | 0]
    b_h = misc[1:2, :]           # packed [    0     |     0     | b_hn | 0]  (stays inside r*(.))
    attn_we = misc[2:3, 0:H]     # encoder half of the attention weight (1, H)

    # --- GRU, non-recurrent half: ONE packed matmul over all steps ----------
    gi = jnp.dot(x, w_i_ref[...], preferred_element_type=jnp.float32) + b_i  # (st, Gp)
    gi_n = gi[:, 2 * H:3 * H]                                                # (st, H)

    w_h = w_h_ref[...]                                                       # (H, Gp)

    # --- GRU, serial recurrence: fully unrolled, ONE matmul + ONE packed -----
    # --- sigmoid per step; per-step states kept in registers (no scratch) ----
    h = h0_ref[...]                                                          # (1, H)
    hs = []
    for t in range(st):
        gh = jnp.dot(h, w_h, preferred_element_type=jnp.float32) + b_h       # (1, Gp)
        sig = jax.nn.sigmoid(gi[t:t + 1, :] + gh)                            # r|z in one EUP push
        r = sig[:, 0:H]
        z = sig[:, H:2 * H]
        n = jnp.tanh(gi_n[t:t + 1, :] + r * gh[:, 2 * H:3 * H])
        h = (1.0 - z) * n + z * h
        hs.append(h)
    hid_ref[...] = h
    gru = jnp.concatenate(hs, axis=0)                                        # (st, H)

    # --- Luong global ("concat") attention -----------------------------------
    # score[t,s] = wg.gru_t + we.enc_s ; softmax over s is shift-invariant, so
    # the decoder-side term cancels exactly: the attention weights (and hence
    # the context row) are the same for every decoder step t.
    enc = enc_ref[...]                                                       # (ss, H)
    d = jnp.sum(enc * attn_we, axis=-1, keepdims=True)                       # (ss, 1)
    m = jnp.max(d, axis=0, keepdims=True)
    p = jnp.exp(d - m)
    w = p * pl.reciprocal(jnp.sum(p, axis=0, keepdims=True), approx=True)    # (ss, 1)
    ctx_row = jnp.sum(w * enc, axis=0, keepdims=True)                        # (1, H)

    # --- Vocab projection: single fused K=2H matmul --------------------------
    # Padded vocab lanes have a -1e30 bias so they underflow to 0 in the LSE.
    act = jnp.concatenate([gru, jnp.broadcast_to(ctx_row, (st, H))], axis=-1)  # (st, 2H)
    logits = (jnp.dot(act, w_out_ref[...], preferred_element_type=jnp.float32)
              + b_out_ref[...])                                              # (st, Vp)

    lmax = jnp.max(logits, axis=-1, keepdims=True)
    lse = jnp.log(jnp.sum(jnp.exp(logits - lmax), axis=-1, keepdims=True)) + lmax
    out_ref[...] = logits - lse                                              # log-softmax


# --------------------------------------------------------------------------- #
# One-time parameter preprocessing (hoisted out of the per-call path)
# --------------------------------------------------------------------------- #
def prepare_luong_decoder_params(params):
    w_ih = jnp.asarray(params["w_ih"], jnp.float32)     # (3H, E)
    w_hh = jnp.asarray(params["w_hh"], jnp.float32)     # (3H, H)
    b_ih = jnp.asarray(params["b_ih"], jnp.float32)     # (3H,)
    b_hh = jnp.asarray(params["b_hh"], jnp.float32)     # (3H,)
    attn_w = jnp.asarray(params["attn_w"], jnp.float32)  # (1, 2H), bias-free Linear(2H->1)
    w_out = jnp.asarray(params["w_out"], jnp.float32)    # (V, 2H)
    b_out = jnp.asarray(params["b_out"], jnp.float32)    # (V,)
    emb_tab = jnp.asarray(params["embedding"], jnp.float32)

    H = w_hh.shape[1]
    E = w_ih.shape[1]
    V = w_out.shape[0]
    Gp = _round_up(3 * H, 128)    # packed-gate lane width (r|z|n at offsets 0/H/2H)
    Vp = _round_up(V, 128)        # lane-dense vocab width

    def pack_gates(w):            # (3H, K) -> (K, Gp) with gate g at lanes [gH:(g+1)H]
        p = jnp.zeros((w.shape[1], Gp), jnp.float32)
        for g in range(3):
            p = p.at[:, g * H:(g + 1) * H].set(w[g * H:(g + 1) * H].T)
        return p

    w_i_packed = pack_gates(w_ih)                        # (E, Gp)
    w_h_packed = pack_gates(w_hh)                        # (H, Gp)

    # misc: row0 = packed input-side biases (r/z biases fold, n-gate input bias),
    #       row1 = packed hidden n-gate bias (must stay inside r*(...)),
    #       row2 = encoder half of the attention weight.
    # NOTE: the decoder half attn_w[:, :H] cancels exactly in the softmax over
    # the encoder axis and is therefore not needed by the kernel.
    misc = jnp.zeros((3, Gp), jnp.float32)
    misc = misc.at[0, 0:H].set(b_ih[0:H] + b_hh[0:H])
    misc = misc.at[0, H:2 * H].set(b_ih[H:2 * H] + b_hh[H:2 * H])
    misc = misc.at[0, 2 * H:3 * H].set(b_ih[2 * H:3 * H])
    misc = misc.at[1, 2 * H:3 * H].set(b_hh[2 * H:3 * H])
    misc = misc.at[2, 0:H].set(attn_w[0, H:])

    w_out_packed = jnp.zeros((2 * H, Vp), jnp.float32).at[:, :V].set(w_out.T)
    b_out_p = jnp.full((1, Vp), -1e30, jnp.float32).at[0, :V].set(b_out)

    return dict(embedding=emb_tab, w_i_packed=w_i_packed, w_h_packed=w_h_packed,
                misc=misc, w_out_packed=w_out_packed, b_out_p=b_out_p,
                H=H, E=E, V=V, Vp=Vp, Gp=Gp)


# --------------------------------------------------------------------------- #
# Per-call wrapper (only the embedding gather + the pallas_call)
# --------------------------------------------------------------------------- #
def luong_global_attention_decoder(tokens, encoder_outputs, prepared, hidden=None):
    """tokens: (st, 1) or (st,) int32; encoder_outputs: (ss, H) float32."""
    tokens = jnp.asarray(tokens).reshape(-1)
    st = int(tokens.shape[0])
    H, V, Vp = prepared["H"], prepared["V"], prepared["Vp"]

    emb = prepared["embedding"][tokens]                  # (st, E) gather — JAX glue
    h0 = (jnp.zeros((1, H), jnp.float32) if hidden is None
          else jnp.asarray(hidden, jnp.float32).reshape(1, H))
    enc = jnp.asarray(encoder_outputs, jnp.float32)      # (ss, H)

    vmem = pl.BlockSpec(memory_space=pltpu.MemorySpace.VMEM)
    out_p, hid = pl.pallas_call(
        _luong_decoder_kernel,
        out_shape=(jax.ShapeDtypeStruct((st, Vp), jnp.float32),
                   jax.ShapeDtypeStruct((1, H), jnp.float32)),
        in_specs=[vmem] * 8,
        out_specs=(vmem, vmem),
    )(emb, h0, enc,
      prepared["w_i_packed"], prepared["w_h_packed"], prepared["misc"],
      prepared["w_out_packed"], prepared["b_out_p"])

    return out_p[:, :V], hid.reshape(1, 1, H)            # (st, V), (n_layers=1, 1, H)


# --------------------------------------------------------------------------- #
# Pure-JAX reference (mirrors the PyTorch forward in eval mode)
# --------------------------------------------------------------------------- #
def _reference(tokens, encoder_outputs, params):
    tokens = tokens.reshape(-1)
    H = params["w_hh"].shape[1]
    emb = jnp.maximum(params["embedding"][tokens], 0.0)  # dropout = identity, then relu

    def gru_cell(h, x):
        gi = x @ params["w_ih"].T + params["b_ih"]
        gh = h @ params["w_hh"].T + params["b_hh"]
        r = jax.nn.sigmoid(gi[:H] + gh[:H])
        z = jax.nn.sigmoid(gi[H:2 * H] + gh[H:2 * H])
        n = jnp.tanh(gi[2 * H:] + r * gh[2 * H:])
        hn = (1.0 - z) * n + z * h
        return hn, hn

    h_last, gru = lax.scan(gru_cell, jnp.zeros((H,), jnp.float32), emb)
    st = gru.shape[0]
    ss = encoder_outputs.shape[0]
    cat = jnp.concatenate(
        [jnp.broadcast_to(gru[:, None, :], (st, ss, H)),
         jnp.broadcast_to(encoder_outputs[None, :, :], (st, ss, H))], axis=-1)
    scores = cat @ params["attn_w"][0]                   # (st, ss)
    w = jax.nn.softmax(scores, axis=-1)
    ctx = w @ encoder_outputs                            # (st, H)
    out = jnp.concatenate([gru, ctx], axis=-1) @ params["w_out"].T + params["b_out"]
    return jax.nn.log_softmax(out, axis=-1), h_last.reshape(1, 1, H)


if __name__ == "__main__":
    # Small deterministic config: hidden=32, embedding=32, vocab(output)=64,
    # target seq st=8, encoder seq ss=8, n_layers=1.
    H, E, V, st, ss = 32, 32, 64, 8, 8

    key = jax.random.PRNGKey(0)
    ks = jax.random.split(key, 10)

    def uinit(k, shape, fan_in):
        bound = 1.0 / np.sqrt(fan_in)
        return jax.random.uniform(k, shape, jnp.float32, -bound, bound)

    params = dict(
        embedding=jax.random.normal(ks[0], (V, E), jnp.float32),
        w_ih=uinit(ks[1], (3 * H, E), H),
        w_hh=uinit(ks[2], (3 * H, H), H),
        b_ih=uinit(ks[3], (3 * H,), H),
        b_hh=uinit(ks[4], (3 * H,), H),
        attn_w=uinit(ks[5], (1, 2 * H), 2 * H),     # attn: Linear(2H -> 1, bias=False)
        w_out=uinit(ks[6], (V, 2 * H), 2 * H),      # out:  Linear(2H -> V)
        b_out=uinit(ks[7], (V,), 2 * H),
    )

    x = jax.random.randint(ks[8], (st, 1), 0, V, dtype=jnp.int32)        # target tokens
    encoder_outputs = jax.random.normal(ks[9], (ss, H), jnp.float32)

    # One-time parameter packing (hoisted out of the decode-call path).
    prepared = prepare_luong_decoder_params(params)

    # Production callers would keep this jitted callable around; the packed
    # params are closed over as constants.
    decode = jax.jit(lambda toks, enc: luong_global_attention_decoder(toks, enc, prepared))

    out, hidden = decode(x, encoder_outputs)
    out = jax.block_until_ready(out)
    hidden = jax.block_until_ready(hidden)

    ref_out, ref_hidden = _reference(x, encoder_outputs, params)
    assert out.shape == (st, V) and hidden.shape == (1, 1, H)
    assert np.allclose(np.asarray(out), np.asarray(ref_out), atol=5e-2, rtol=5e-2)
    assert np.allclose(np.asarray(hidden), np.asarray(ref_hidden), atol=5e-2, rtol=5e-2)

    print("KERNEL_OK")
</pallas_src>

<mosaic_0001>
module attributes {stable_mosaic.version = 11 : i64} {
  func.func @_luong_decoder_kernel(%arg0: memref<8x32xf32, #tpu.memory_space<vmem>>, %arg1: memref<1x32xf32, #tpu.memory_space<vmem>>, %arg2: memref<8x32xf32, #tpu.memory_space<vmem>>, %arg3: memref<32x128xf32, #tpu.memory_space<vmem>>, %arg4: memref<32x128xf32, #tpu.memory_space<vmem>>, %arg5: memref<3x128xf32, #tpu.memory_space<vmem>>, %arg6: memref<64x128xf32, #tpu.memory_space<vmem>>, %arg7: memref<1x128xf32, #tpu.memory_space<vmem>>, %arg8: memref<8x128xf32, #tpu.memory_space<vmem>>, %arg9: memref<1x32xf32, #tpu.memory_space<vmem>>) attributes {dimension_semantics = [], scalar_prefetch = 0 : i64, scratch_operands = 0 : i64, tpu.core_type = #tpu.core_type<tc>} {
    %c0 = arith.constant 0 : index
    %c0_0 = arith.constant 0 : index
    %0 = vector.load %arg0[%c0, %c0_0] : memref<8x32xf32, #tpu.memory_space<vmem>>, vector<8x32xf32>
    %cst = arith.constant 0.000000e+00 : f32
    %1 = vector.broadcast %cst : f32 to vector<8x32xf32>
    %2 = arith.maximumf %0, %1 : vector<8x32xf32>
    %c0_1 = arith.constant 0 : index
    %c0_2 = arith.constant 0 : index
    %3 = vector.load %arg5[%c0_1, %c0_2] : memref<3x128xf32, #tpu.memory_space<vmem>>, vector<3x128xf32>
    %4 = vector.extract_strided_slice %3 {offsets = [0, 0], sizes = [1, 128], strides = [1, 1]} : vector<3x128xf32> to vector<1x128xf32>
    %5 = vector.extract_strided_slice %3 {offsets = [1, 0], sizes = [1, 128], strides = [1, 1]} : vector<3x128xf32> to vector<1x128xf32>
    %6 = vector.extract_strided_slice %3 {offsets = [2, 0], sizes = [1, 32], strides = [1, 1]} : vector<3x128xf32> to vector<1x32xf32>
    %c0_3 = arith.constant 0 : index
    %c0_4 = arith.constant 0 : index
    %7 = vector.load %arg3[%c0_3, %c0_4] : memref<32x128xf32, #tpu.memory_space<vmem>>, vector<32x128xf32>
    %cst_5 = arith.constant dense<0.000000e+00> : vector<8x128xf32>
    %8 = tpu.matmul %2, %7, %cst_5 {dimension_numbers = #tpu.dot_dimension_numbers<[1], [0], [0], [1], [0, 0, 1, 1], [], []>} : vector<8x32xf32>, vector<32x128xf32>, vector<8x128xf32> -> vector<8x128xf32>
    %9 = vector.broadcast %4 : vector<1x128xf32> to vector<8x128xf32>
    %10 = arith.addf %8, %9 : vector<8x128xf32>
    %11 = vector.extract_strided_slice %10 {offsets = [0, 64], sizes = [8, 32], strides = [1, 1]} : vector<8x128xf32> to vector<8x32xf32>
    %c0_6 = arith.constant 0 : index
    %c0_7 = arith.constant 0 : index
    %12 = vector.load %arg4[%c0_6, %c0_7] : memref<32x128xf32, #tpu.memory_space<vmem>>, vector<32x128xf32>
    %c0_8 = arith.constant 0 : index
    %c0_9 = arith.constant 0 : index
    %13 = vector.load %arg1[%c0_8, %c0_9] : memref<1x32xf32, #tpu.memory_space<vmem>>, vector<1x32xf32>
    %cst_10 = arith.constant dense<0.000000e+00> : vector<1x128xf32>
    %14 = tpu.matmul %13, %12, %cst_10 {dimension_numbers = #tpu.dot_dimension_numbers<[1], [0], [0], [1], [0, 0, 1, 1], [], []>} : vector<1x32xf32>, vector<32x128xf32>, vector<1x128xf32> -> vector<1x128xf32>
    %15 = arith.addf %14, %5 : vector<1x128xf32>
    %16 = vector.extract_strided_slice %10 {offsets = [0, 0], sizes = [1, 128], strides = [1, 1]} : vector<8x128xf32> to vector<1x128xf32>
    %17 = arith.addf %16, %15 : vector<1x128xf32>
    %18 = arith.negf %17 : vector<1x128xf32>
    %19 = math.exp %18 : vector<1x128xf32>
    %cst_11 = arith.constant 1.000000e+00 : f32
    %20 = vector.broadcast %cst_11 : f32 to vector<1x128xf32>
    %21 = arith.addf %20, %19 : vector<1x128xf32>
    %22 = arith.divf %20, %21 : vector<1x128xf32>
    %23 = vector.extract_strided_slice %22 {offsets = [0, 0], sizes = [1, 32], strides = [1, 1]} : vector<1x128xf32> to vector<1x32xf32>
    %24 = vector.extract_strided_slice %22 {offsets = [0, 32], sizes = [1, 32], strides = [1, 1]} : vector<1x128xf32> to vector<1x32xf32>
    %25 = vector.extract_strided_slice %11 {offsets = [0, 0], sizes = [1, 32], strides = [1, 1]} : vector<8x32xf32> to vector<1x32xf32>
    %26 = vector.extract_strided_slice %15 {offsets = [0, 64], sizes = [1, 32], strides = [1, 1]} : vector<1x128xf32> to vector<1x32xf32>
    %27 = arith.mulf %23, %26 : vector<1x32xf32>
    %28 = arith.addf %25, %27 : vector<1x32xf32>
    %29 = math.tanh %28 : vector<1x32xf32>
    %cst_12 = arith.constant 1.000000e+00 : f32
    %30 = vector.broadcast %cst_12 : f32 to vector<1x32xf32>
    %31 = arith.subf %30, %24 : vector<1x32xf32>
    %32 = arith.mulf %31, %29 : vector<1x32xf32>
    %33 = arith.mulf %24, %13 : vector<1x32xf32>
    %34 = arith.addf %32, %33 : vector<1x32xf32>
    %cst_13 = arith.constant dense<0.000000e+00> : vector<1x128xf32>
    %35 = tpu.matmul %34, %12, %cst_13 {dimension_numbers = #tpu.dot_dimension_numbers<[1], [0], [0], [1], [0, 0, 1, 1], [], []>} : vector<1x32xf32>, vector<32x128xf32>, vector<1x128xf32> -> vector<1x128xf32>
    %36 = arith.addf %35, %5 : vector<1x128xf32>
    %37 = vector.extract_strided_slice %10 {offsets = [1, 0], sizes = [1, 128], strides = [1, 1]} : vector<8x128xf32> to vector<1x128xf32>
    %38 = arith.addf %37, %36 : vector<1x128xf32>
    %39 = arith.negf %38 : vector<1x128xf32>
    %40 = math.exp %39 : vector<1x128xf32>
    %cst_14 = arith.constant 1.000000e+00 : f32
    %41 = vector.broadcast %cst_14 : f32 to vector<1x128xf32>
    %42 = arith.addf %41, %40 : vector<1x128xf32>
    %43 = arith.divf %41, %42 : vector<1x128xf32>
    %44 = vector.extract_strided_slice %43 {offsets = [0, 0], sizes = [1, 32], strides = [1, 1]} : vector<1x128xf32> to vector<1x32xf32>
    %45 = vector.extract_strided_slice %43 {offsets = [0, 32], sizes = [1, 32], strides = [1, 1]} : vector<1x128xf32> to vector<1x32xf32>
    %46 = vector.extract_strided_slice %11 {offsets = [1, 0], sizes = [1, 32], strides = [1, 1]} : vector<8x32xf32> to vector<1x32xf32>
    %47 = vector.extract_strided_slice %36 {offsets = [0, 64], sizes = [1, 32], strides = [1, 1]} : vector<1x128xf32> to vector<1x32xf32>
    %48 = arith.mulf %44, %47 : vector<1x32xf32>
    %49 = arith.addf %46, %48 : vector<1x32xf32>
    %50 = math.tanh %49 : vector<1x32xf32>
    %cst_15 = arith.constant 1.000000e+00 : f32
    %51 = vector.broadcast %cst_15 : f32 to vector<1x32xf32>
    %52 = arith.subf %51, %45 : vector<1x32xf32>
    %53 = arith.mulf %52, %50 : vector<1x32xf32>
    %54 = arith.mulf %45, %34 : vector<1x32xf32>
    %55 = arith.addf %53, %54 : vector<1x32xf32>
    %cst_16 = arith.constant dense<0.000000e+00> : vector<1x128xf32>
    %56 = tpu.matmul %55, %12, %cst_16 {dimension_numbers = #tpu.dot_dimension_numbers<[1], [0], [0], [1], [0, 0, 1, 1], [], []>} : vector<1x32xf32>, vector<32x128xf32>, vector<1x128xf32> -> vector<1x128xf32>
    %57 = arith.addf %56, %5 : vector<1x128xf32>
    %58 = vector.extract_strided_slice %10 {offsets = [2, 0], sizes = [1, 128], strides = [1, 1]} : vector<8x128xf32> to vector<1x128xf32>
    %59 = arith.addf %58, %57 : vector<1x128xf32>
    %60 = arith.negf %59 : vector<1x128xf32>
    %61 = math.exp %60 : vector<1x128xf32>
    %cst_17 = arith.constant 1.000000e+00 : f32
    %62 = vector.broadcast %cst_17 : f32 to vector<1x128xf32>
    %63 = arith.addf %62, %61 : vector<1x128xf32>
    %64 = arith.divf %62, %63 : vector<1x128xf32>
    %65 = vector.extract_strided_slice %64 {offsets = [0, 0], sizes = [1, 32], strides = [1, 1]} : vector<1x128xf32> to vector<1x32xf32>
    %66 = vector.extract_strided_slice %64 {offsets = [0, 32], sizes = [1, 32], strides = [1, 1]} : vector<1x128xf32> to vector<1x32xf32>
    %67 = vector.extract_strided_slice %11 {offsets = [2, 0], sizes = [1, 32], strides = [1, 1]} : vector<8x32xf32> to vector<1x32xf32>
    %68 = vector.extract_strided_slice %57 {offsets = [0, 64], sizes = [1, 32], strides = [1, 1]} : vector<1x128xf32> to vector<1x32xf32>
    %69 = arith.mulf %65, %68 : vector<1x32xf32>
    %70 = arith.addf %67, %69 : vector<1x32xf32>
    %71 = math.tanh %70 : vector<1x32xf32>
    %cst_18 = arith.constant 1.000000e+00 : f32
    %72 = vector.broadcast %cst_18 : f32 to vector<1x32xf32>
    %73 = arith.subf %72, %66 : vector<1x32xf32>
    %74 = arith.mulf %73, %71 : vector<1x32xf32>
    %75 = arith.mulf %66, %55 : vector<1x32xf32>
    %76 = arith.addf %74, %75 : vector<1x32xf32>
    %cst_19 = arith.constant dense<0.000000e+00> : vector<1x128xf32>
    %77 = tpu.matmul %76, %12, %cst_19 {dimension_numbers = #tpu.dot_dimension_numbers<[1], [0], [0], [1], [0, 0, 1, 1], [], []>} : vector<1x32xf32>, vector<32x128xf32>, vector<1x128xf32> -> vector<1x128xf32>
    %78 = arith.addf %77, %5 : vector<1x128xf32>
    %79 = vector.extract_strided_slice %10 {offsets = [3, 0], sizes = [1, 128], strides = [1, 1]} : vector<8x128xf32> to vector<1x128xf32>
    %80 = arith.addf %79, %78 : vector<1x128xf32>
    %81 = arith.negf %80 : vector<1x128xf32>
    %82 = math.exp %81 : vector<1x128xf32>
    %cst_20 = arith.constant 1.000000e+00 : f32
    %83 = vector.broadcast %cst_20 : f32 to vector<1x128xf32>
    %84 = arith.addf %83, %82 : vector<1x128xf32>
    %85 = arith.divf %83, %84 : vector<1x128xf32>
    %86 = vector.extract_strided_slice %85 {offsets = [0, 0], sizes = [1, 32], strides = [1, 1]} : vector<1x128xf32> to vector<1x32xf32>
    %87 = vector.extract_strided_slice %85 {offsets = [0, 32], sizes = [1, 32], strides = [1, 1]} : vector<1x128xf32> to vector<1x32xf32>
    %88 = vector.extract_strided_slice %11 {offsets = [3, 0], sizes = [1, 32], strides = [1, 1]} : vector<8x32xf32> to vector<1x32xf32>
    %89 = vector.extract_strided_slice %78 {offsets = [0, 64], sizes = [1, 32], strides = [1, 1]} : vector<1x128xf32> to vector<1x32xf32>
    %90 = arith.mulf %86, %89 : vector<1x32xf32>
    %91 = arith.addf %88, %90 : vector<1x32xf32>
    %92 = math.tanh %91 : vector<1x32xf32>
    %cst_21 = arith.constant 1.000000e+00 : f32
    %93 = vector.broadcast %cst_21 : f32 to vector<1x32xf32>
    %94 = arith.subf %93, %87 : vector<1x32xf32>
    %95 = arith.mulf %94, %92 : vector<1x32xf32>
    %96 = arith.mulf %87, %76 : vector<1x32xf32>
    %97 = arith.addf %95, %96 : vector<1x32xf32>
    %cst_22 = arith.constant dense<0.000000e+00> : vector<1x128xf32>
    %98 = tpu.matmul %97, %12, %cst_22 {dimension_numbers = #tpu.dot_dimension_numbers<[1], [0], [0], [1], [0, 0, 1, 1], [], []>} : vector<1x32xf32>, vector<32x128xf32>, vector<1x128xf32> -> vector<1x128xf32>
    %99 = arith.addf %98, %5 : vector<1x128xf32>
    %100 = vector.extract_strided_slice %10 {offsets = [4, 0], sizes = [1, 128], strides = [1, 1]} : vector<8x128xf32> to vector<1x128xf32>
    %101 = arith.addf %100, %99 : vector<1x128xf32>
    %102 = arith.negf %101 : vector<1x128xf32>
    %103 = math.exp %102 : vector<1x128xf32>
    %cst_23 = arith.constant 1.000000e+00 : f32
    %104 = vector.broadcast %cst_23 : f32 to vector<1x128xf32>
    %105 = arith.addf %104, %103 : vector<1x128xf32>
    %106 = arith.divf %104, %105 : vector<1x128xf32>
    %107 = vector.extract_strided_slice %106 {offsets = [0, 0], sizes = [1, 32], strides = [1, 1]} : vector<1x128xf32> to vector<1x32xf32>
    %108 = vector.extract_strided_slice %106 {offsets = [0, 32], sizes = [1, 32], strides = [1, 1]} : vector<1x128xf32> to vector<1x32xf32>
    %109 = vector.extract_strided_slice %11 {offsets = [4, 0], sizes = [1, 32], strides = [1, 1]} : vector<8x32xf32> to vector<1x32xf32>
    %110 = vector.extract_strided_slice %99 {offsets = [0, 64], sizes = [1, 32], strides = [1, 1]} : vector<1x128xf32> to vector<1x32xf32>
    %111 = arith.mulf %107, %110 : vector<1x32xf32>
    %112 = arith.addf %109, %111 : vector<1x32xf32>
    %113 = math.tanh %112 : vector<1x32xf32>
    %cst_24 = arith.constant 1.000000e+00 : f32
    %114 = vector.broadcast %cst_24 : f32 to vector<1x32xf32>
    %115 = arith.subf %114, %108 : vector<1x32xf32>
    %116 = arith.mulf %115, %113 : vector<1x32xf32>
    %117 = arith.mulf %108, %97 : vector<1x32xf32>
    %118 = arith.addf %116, %117 : vector<1x32xf32>
    %cst_25 = arith.constant dense<0.000000e+00> : vector<1x128xf32>
    %119 = tpu.matmul %118, %12, %cst_25 {dimension_numbers = #tpu.dot_dimension_numbers<[1], [0], [0], [1], [0, 0, 1, 1], [], []>} : vector<1x32xf32>, vector<32x128xf32>, vector<1x128xf32> -> vector<1x128xf32>
    %120 = arith.addf %119, %5 : vector<1x128xf32>
    %121 = vector.extract_strided_slice %10 {offsets = [5, 0], sizes = [1, 128], strides = [1, 1]} : vector<8x128xf32> to vector<1x128xf32>
    %122 = arith.addf %121, %120 : vector<1x128xf32>
    %123 = arith.negf %122 : vector<1x128xf32>
    %124 = math.exp %123 : vector<1x128xf32>
    %cst_26 = arith.constant 1.000000e+00 : f32
    %125 = vector.broadcast %cst_26 : f32 to vector<1x128xf32>
    %126 = arith.addf %125, %124 : vector<1x128xf32>
    %127 = arith.divf %125, %126 : vector<1x128xf32>
    %128 = vector.extract_strided_slice %127 {offsets = [0, 0], sizes = [1, 32], strides = [1, 1]} : vector<1x128xf32> to vector<1x32xf32>
    %129 = vector.extract_strided_slice %127 {offsets = [0, 32], sizes = [1, 32], strides = [1, 1]} : vector<1x128xf32> to vector<1x32xf32>
    %130 = vector.extract_strided_slice %11 {offsets = [5, 0], sizes = [1, 32], strides = [1, 1]} : vector<8x32xf32> to vector<1x32xf32>
    %131 = vector.extract_strided_slice %120 {offsets = [0, 64], sizes = [1, 32], strides = [1, 1]} : vector<1x128xf32> to vector<1x32xf32>
    %132 = arith.mulf %128, %131 : vector<1x32xf32>
    %133 = arith.addf %130, %132 : vector<1x32xf32>
    %134 = math.tanh %133 : vector<1x32xf32>
    %cst_27 = arith.constant 1.000000e+00 : f32
    %135 = vector.broadcast %cst_27 : f32 to vector<1x32xf32>
    %136 = arith.subf %135, %129 : vector<1x32xf32>
    %137 = arith.mulf %136, %134 : vector<1x32xf32>
    %138 = arith.mulf %129, %118 : vector<1x32xf32>
    %139 = arith.addf %137, %138 : vector<1x32xf32>
    %cst_28 = arith.constant dense<0.000000e+00> : vector<1x128xf32>
    %140 = tpu.matmul %139, %12, %cst_28 {dimension_numbers = #tpu.dot_dimension_numbers<[1], [0], [0], [1], [0, 0, 1, 1], [], []>} : vector<1x32xf32>, vector<32x128xf32>, vector<1x128xf32> -> vector<1x128xf32>
    %141 = arith.addf %140, %5 : vector<1x128xf32>
    %142 = vector.extract_strided_slice %10 {offsets = [6, 0], sizes = [1, 128], strides = [1, 1]} : vector<8x128xf32> to vector<1x128xf32>
    %143 = arith.addf %142, %141 : vector<1x128xf32>
    %144 = arith.negf %143 : vector<1x128xf32>
    %145 = math.exp %144 : vector<1x128xf32>
    %cst_29 = arith.constant 1.000000e+00 : f32
    %146 = vector.broadcast %cst_29 : f32 to vector<1x128xf32>
    %147 = arith.addf %146, %145 : vector<1x128xf32>
    %148 = arith.divf %146, %147 : vector<1x128xf32>
    %149 = vector.extract_strided_slice %148 {offsets = [0, 0], sizes = [1, 32], strides = [1, 1]} : vector<1x128xf32> to vector<1x32xf32>
    %150 = vector.extract_strided_slice %148 {offsets = [0, 32], sizes = [1, 32], strides = [1, 1]} : vector<1x128xf32> to vector<1x32xf32>
    %151 = vector.extract_strided_slice %11 {offsets = [6, 0], sizes = [1, 32], strides = [1, 1]} : vector<8x32xf32> to vector<1x32xf32>
    %152 = vector.extract_strided_slice %141 {offsets = [0, 64], sizes = [1, 32], strides = [1, 1]} : vector<1x128xf32> to vector<1x32xf32>
    %153 = arith.mulf %149, %152 : vector<1x32xf32>
    %154 = arith.addf %151, %153 : vector<1x32xf32>
    %155 = math.tanh %154 : vector<1x32xf32>
    %cst_30 = arith.constant 1.000000e+00 : f32
    %156 = vector.broadcast %cst_30 : f32 to vector<1x32xf32>
    %157 = arith.subf %156, %150 : vector<1x32xf32>
    %158 = arith.mulf %157, %155 : vector<1x32xf32>
    %159 = arith.mulf %150, %139 : vector<1x32xf32>
    %160 = arith.addf %158, %159 : vector<1x32xf32>
    %cst_31 = arith.constant dense<0.000000e+00> : vector<1x128xf32>
    %161 = tpu.matmul %160, %12, %cst_31 {dimension_numbers = #tpu.dot_dimension_numbers<[1], [0], [0], [1], [0, 0, 1, 1], [], []>} : vector<1x32xf32>, vector<32x128xf32>, vector<1x128xf32> -> vector<1x128xf32>
    %162 = arith.addf %161, %5 : vector<1x128xf32>
    %163 = vector.extract_strided_slice %10 {offsets = [7, 0], sizes = [1, 128], strides = [1, 1]} : vector<8x128xf32> to vector<1x128xf32>
    %164 = arith.addf %163, %162 : vector<1x128xf32>
    %165 = arith.negf %164 : vector<1x128xf32>
    %166 = math.exp %165 : vector<1x128xf32>
    %cst_32 = arith.constant 1.000000e+00 : f32
    %167 = vector.broadcast %cst_32 : f32 to vector<1x128xf32>
    %168 = arith.addf %167, %166 : vector<1x128xf32>
    %169 = arith.divf %167, %168 : vector<1x128xf32>
    %170 = vector.extract_strided_slice %169 {offsets = [0, 0], sizes = [1, 32], strides = [1, 1]} : vector<1x128xf32> to vector<1x32xf32>
    %171 = vector.extract_strided_slice %169 {offsets = [0, 32], sizes = [1, 32], strides = [1, 1]} : vector<1x128xf32> to vector<1x32xf32>
    %172 = vector.extract_strided_slice %11 {offsets = [7, 0], sizes = [1, 32], strides = [1, 1]} : vector<8x32xf32> to vector<1x32xf32>
    %173 = vector.extract_strided_slice %162 {offsets = [0, 64], sizes = [1, 32], strides = [1, 1]} : vector<1x128xf32> to vector<1x32xf32>
    %174 = arith.mulf %170, %173 : vector<1x32xf32>
    %175 = arith.addf %172, %174 : vector<1x32xf32>
    %176 = math.tanh %175 : vector<1x32xf32>
    %cst_33 = arith.constant 1.000000e+00 : f32
    %177 = vector.broadcast %cst_33 : f32 to vector<1x32xf32>
    %178 = arith.subf %177, %171 : vector<1x32xf32>
    %179 = arith.mulf %178, %176 : vector<1x32xf32>
    %180 = arith.mulf %171, %160 : vector<1x32xf32>
    %181 = arith.addf %179, %180 : vector<1x32xf32>
    %c0_34 = arith.constant 0 : index
    %c0_35 = arith.constant 0 : index
    %182 = vector.load %arg9[%c0_34, %c0_35] : memref<1x32xf32, #tpu.memory_space<vmem>>, vector<1x32xf32>
    tpu.vector_store %arg9[%c0_34, %c0_35], %181 {strides = array<i32>} : memref<1x32xf32, #tpu.memory_space<vmem>>, vector<1x32xf32>,
    %183 = tpu.concatenate %34, %55, %76, %97, %118, %139, %160, %181 in 0 : vector<1x32xf32>, vector<1x32xf32>, vector<1x32xf32>, vector<1x32xf32>, vector<1x32xf32>, vector<1x32xf32>, vector<1x32xf32>, vector<1x32xf32> -> vector<8x32xf32>
    %c0_36 = arith.constant 0 : index
    %c0_37 = arith.constant 0 : index
    %184 = vector.load %arg2[%c0_36, %c0_37] : memref<8x32xf32, #tpu.memory_space<vmem>>, vector<8x32xf32>
    %185 = vector.broadcast %6 : vector<1x32xf32> to vector<8x32xf32>
    %186 = arith.mulf %184, %185 : vector<8x32xf32>
    %cst_38 = arith.constant dense<0.000000e+00> : vector<8xf32>
    %187 = vector.multi_reduction <add>, %186, %cst_38 [1] : vector<8x32xf32> to vector<8xf32>
    %188 = vector.shape_cast %187 : vector<8xf32> to vector<8x1xf32>
    %cst_39 = arith.constant dense<0xFF800000> : vector<1xf32>
    %189 = vector.multi_reduction <maximumf>, %188, %cst_39 [0] : vector<8x1xf32> to vector<1xf32>
    %190 = vector.shape_cast %189 : vector<1xf32> to vector<1x1xf32>
    %191 = vector.broadcast %190 : vector<1x1xf32> to vector<8x1xf32>
    %192 = arith.subf %188, %191 : vector<8x1xf32>
    %193 = math.exp %192 : vector<8x1xf32>
    %cst_40 = arith.constant dense<0.000000e+00> : vector<1xf32>
    %194 = vector.multi_reduction <add>, %193, %cst_40 [0] : vector<8x1xf32> to vector<1xf32>
    %195 = vector.shape_cast %194 : vector<1xf32> to vector<1x1xf32>
    %196 = tpu.reciprocal %195 {approx = true} : vector<1x1xf32> -> vector<1x1xf32>
    %197 = vector.broadcast %196 : vector<1x1xf32> to vector<8x1xf32>
    %198 = arith.mulf %193, %197 : vector<8x1xf32>
    %199 = vector.broadcast %198 : vector<8x1xf32> to vector<8x32xf32>
    %200 = arith.mulf %199, %184 : vector<8x32xf32>
    %cst_41 = arith.constant dense<0.000000e+00> : vector<32xf32>
    %201 = vector.multi_reduction <add>, %200, %cst_41 [0] : vector<8x32xf32> to vector<32xf32>
    %202 = vector.shape_cast %201 : vector<32xf32> to vector<1x32xf32>
    %203 = vector.shape_cast %202 : vector<1x32xf32> to vector<1x32xf32>
    %204 = vector.broadcast %203 : vector<1x32xf32> to vector<8x32xf32>
    %205 = tpu.concatenate %183, %204 in 1 : vector<8x32xf32>, vector<8x32xf32> -> vector<8x64xf32>
    %c0_42 = arith.constant 0 : index
    %c0_43 = arith.constant 0 : index
    %206 = vector.load %arg6[%c0_42, %c0_43] : memref<64x128xf32, #tpu.memory_space<vmem>>, vector<64x128xf32>
    %cst_44 = arith.constant dense<0.000000e+00> : vector<8x128xf32>
    %207 = tpu.matmul %205, %206, %cst_44 {dimension_numbers = #tpu.dot_dimension_numbers<[1], [0], [0], [1], [0, 0, 1, 1], [], []>} : vector<8x64xf32>, vector<64x128xf32>, vector<8x128xf32> -> vector<8x128xf32>
    %c0_45 = arith.constant 0 : index
    %c0_46 = arith.constant 0 : index
    %208 = vector.load %arg7[%c0_45, %c0_46] : memref<1x128xf32, #tpu.memory_space<vmem>>, vector<1x128xf32>
    %209 = vector.broadcast %208 : vector<1x128xf32> to vector<8x128xf32>
    %210 = arith.addf %207, %209 : vector<8x128xf32>
    %cst_47 = arith.constant dense<0xFF800000> : vector<8xf32>
    %211 = vector.multi_reduction <maximumf>, %210, %cst_47 [1] : vector<8x128xf32> to vector<8xf32>
    %212 = vector.shape_cast %211 : vector<8xf32> to vector<8x1xf32>
    %213 = vector.broadcast %212 : vector<8x1xf32> to vector<8x128xf32>
    %214 = arith.subf %210, %213 : vector<8x128xf32>
    %215 = math.exp %214 : vector<8x128xf32>
    %cst_48 = arith.constant dense<0.000000e+00> : vector<8xf32>
    %216 = vector.multi_reduction <add>, %215, %cst_48 [1] : vector<8x128xf32> to vector<8xf32>
    %217 = vector.shape_cast %216 : vector<8xf32> to vector<8x1xf32>
    %218 = math.log %217 : vector<8x1xf32>
    %219 = arith.addf %218, %212 : vector<8x1xf32>
    %220 = vector.broadcast %219 : vector<8x1xf32> to vector<8x128xf32>
    %221 = arith.subf %210, %220 : vector<8x128xf32>
    %c0_49 = arith.constant 0 : index
    %c0_50 = arith.constant 0 : index
    %222 = vector.load %arg8[%c0_49, %c0_50] : memref<8x128xf32, #tpu.memory_space<vmem>>, vector<8x128xf32>
    tpu.vector_store %arg8[%c0_49, %c0_50], %221 {strides = array<i32>} : memref<8x128xf32, #tpu.memory_space<vmem>>, vector<8x128xf32>,
    return
  }
}

</mosaic_0001>

<bundles_post_ra>
// kernel: _lambda_.1
= control target key start
LH: loop header
LB: loop body
LE: loop exit
PB: predicated region body
PF: predicated region fallthrough
CT: control target
= control target key end

     0   :  { %15 = vsyncpa [#allocation3], 0  ;;  %s1883_s0 = inlined_call_operand.vmem [shape: f32[8,32], index: 0, kind: input, shape index: {}]   ;;  %s1884_s1 = inlined_call_operand.vmem [shape: f32[1,32], index: 1, kind: input, shape index: {}]   ;;  %s1885_s2 = inlined_call_operand.vmem [shape: f32[8,32], index: 2, kind: input, shape index: {}]   ;;  %s1886_s3 = inlined_call_operand.hbm [shape: f32[32,128], index: 3, kind: input, shape index: {}]   ;;  %s1887_s4 = inlined_call_operand.vmem [shape: f32[32,128], index: 4, kind: input, shape index: {}]   ;;  %s1888_s5 = inlined_call_operand.vmem [shape: f32[3,128], index: 5, kind: input, shape index: {}]   ;;  %s1889_s6 = inlined_call_operand.vmem [shape: f32[64,128], index: 6, kind: input, shape index: {}]   ;;  %s1890_s7 = inlined_call_operand.vmem [shape: f32[1,128], index: 7, kind: input, shape index: {}]   ;;  %s1891_s8 = inlined_call_operand.hbm [shape: f32[8,128], index: 8, kind: output, shape index: {0}]   ;;  %s1892_s9 = inlined_call_operand.hbm [shape: f32[1,32], index: 9, kind: output, shape index: {1}]  }
   0x1   :  { %16 = vsyncpa [#allocation4], 0 }
   0x2   :  { %17 = vsyncpa [#allocation7], 0  ;;  %s1576_s30 = smov [#allocation2]   ;;  %s1504_s13 = scalar_lea.hbm %s1886_s3, 512 }
   0x3   :  { %s29_s10 = sshll.u32 %s1576_s30, 4  ;;  %p1505_p0 = scmp.ne.s32.totalorder %s1886_s3, %s1504_s13  ;;  %s30_s10 = int_to_ptr.vmem [resolvable:$true] %s29_s10 }
   0x4   :  { %p1508_p1 = scmp.lt.u32.totalorder %s1504_s13, %s1886_s3 }
   0x6   :  { %p1510_p2 = pnand %p1508_p1, %p1505_p0 }
   0x8   :  { %1513 = shalt.err (!%p1510_p2)
}
   0x9   :  { %s1514_s18 = scalar_lea.vmem %s30_s10, 512  ;;  %p1519_p4 = scmp.lt.s32.totalorder %s30_s10, %s30_s10 }
   0xa   :  { %p1515_p3 = scmp.ne.s32.totalorder %s30_s10, %s1514_s18  ;;  %p1520_p5 = scmp.lt.s32.totalorder %s1514_s18, %s1514_s18 }
   0xc   :  { %p1521_p6 = por %p1520_p5, %p1519_p4 }
   0xe   :  { %p1522_p7 = pnand %p1521_p6, %p1515_p3 }
  0x10   :  { %1525 = shalt.err (!%p1522_p7)
}
  0x11   :  { %s1577_s19 = smov 128   ;;  %s1578_s20 = smov 8  }
  0x12   :  { %35 = dma.hbm_to_vmem [thread:$0]  %s1886_s3, 512, %s30_s10, [#allocation3], %s1577_s19, %s1577_s19, %s1578_s20  }
  0x13   :  { %1570 = dma.done.wait [#allocation3], 512  }
  0x14   :  { %1571 = vsyncadd [#allocation3], 4294966784  ;;  %v1579_v0 = vmov 0.0|0.0   ;;  %vm1580_vm0 = vmmov 0   ;;  %v1581_v1 = vmov 0.0   ;;  %v50_v2 = vld [vmem:[#allocation2] sm:$0xff]  ;;  %v54_v24 = vlaneseq }
  0x15   :  { %1371 = vmatprep.subr.bf16.mxu0 %v1579_v0  ;;  %1377 = vmatprep.subr.bf16.mxu1 %v1579_v0  ;;  %v51_v3 = vld [vmem:[#allocation2 + $0x8] sm:$0xff]  ;;  %v132_v4 = vld [vmem:[%s1887_s4] sm:$0xff]  ;;  %v52_v7 = vld [vmem:[#allocation2 + $0x10] sm:$0xff]  ;;  %vm58_vm1 = vcmask 261120   ;;  %s1582_s12 = smov 64   ;;  %s1584_s13 = smov 32  }
  0x16   :  { %1261 = vmatprep.mubr.msk.f32.mxu0 %vm1580_vm0, %v1581_v1  ;;  %1272 = vmatprep.mubr.msk.f32.mxu1 %vm1580_vm0, %v1581_v1  ;;  %v1372_v5 = vpack.c.bf16 %v51_v3, %v50_v2  ;;  %v133_v6 = vld [vmem:[%s1887_s4 + $0x8] sm:$0xff]  ;;  %v53_v8 = vld [vmem:[#allocation2 + $0x18] sm:$0xff]  ;;  %v134_v10 = vld [vmem:[%s1887_s4 + $0x10] sm:$0xff]  ;;  %v1707_v25 = vshrl.u32 %v54_v24, 7  ;;  %vm993_vm2 = vcmask 1040384   ;;  %vm995_vm3 = vcmask 1041408  }
  0x17   :  { %v1661_v9 = vpack.c.bf16 %v133_v6, %v132_v4  ;;  %v135_v11 = vld [vmem:[%s1887_s4 + $0x18] sm:$0xff]  ;;  %v1375_v12 = vpack.c.bf16 %v53_v8, %v52_v7  ;;  %v47_v13 = vld [vmem:[%s1883_s0] sm:$0xff]  ;;  %vm997_vm4 = vcmask 1042432   ;;  %vm999_vm5 = vcmask 1043456   ;;  %s1585_s10 = smov [#allocation6]  }
  0x18   :  { %1373 = vmatpush3.bf16.msra.mxu0 %v1372_v5  ;;  %v1674_v14 = vpack.c.bf16 %v135_v11, %v134_v10  ;;  %v48_v15 = vmax.f32 %v47_v13, 0.0  ;;  %v136_v16 = vld [vmem:[%s1884_s1] sm:$0x1]  ;;  %v56_v26 = vsub.s32 0, %v1707_v25  ;;  %vm1001_vm6 = vcmask 1044480   ;;  %s1167_s4 = sshll.u32 %s1585_s10, 4  ;;  %s1168_s4 = int_to_ptr.vmem [resolvable:$true] %s1167_s4 }
  0x19   :  { %1379 = vmatpush3.bf16.msra.mxu1 %v1661_v9  ;;  %1374 = vmatprep.subr.bf16.mxu0 %v1579_v0  ;;  %v1700_v17 = vld [vmem:[%s1888_s5] sm:$0x7]  ;;  %s1583_s5 = smov 96   ;;  %vm1003_vm7 = vcmask 1045504   ;;  %vm1005_vm8 = vcmask 1046528   ;;  %vm1065_vm9 = vcmask 523264   ;;  %p1531_p9 = scmp.lt.s32.totalorder %s1168_s4, %s1168_s4 }
  0x1a   :  { %1380 = vmatprep.subr.bf16.mxu1 %v1579_v0  ;;  %v1703_v18 = vrot.slane %v1700_v17, 1  ;;  %v57_v27 = vrot.slane %v1700_v17, %v56_v26  ;;  %v240_v39 = vrot.slane %v136_v16, %v56_v26  ;;  %vm991_vm10 = vcmask 261127   ;;  %s1530_s11 = scalar_lea.vmem %s1168_s4, 32 }
  0x1c   :  { %1376 = vmatpush3.bf16.msra.mxu0 %v1375_v12 }
  0x1d   :  { %1382 = vmatpush3.bf16.msra.mxu1 %v1674_v14  ;;  %1383 = vmatprep.subr.bf16.mxu0 %v1579_v0 }
  0x1e   :  { %1389 = vmatprep.subr.bf16.mxu1 %v1579_v0 }
  0x1f   :  { %1262 = vmatmul.mubr.msk.f32.vlgmr.msra.gmra.mrb[0].mxu0 %vm58_vm1, %v48_v15 }
  0x20   :  { %1273 = vmatmul.mubr.msk.f32.vlgmr.msra.gmra.mrb[0].mxu1 %vm58_vm1, %v136_v16  ;;  %1385 = vmatpush3.bf16.msra.mxu0 %v1661_v9 }
  0x21   :  { %1386 = vmatprep.subr.bf16.mxu0 %v1579_v0  ;;  %1283 = vmatprep.mubr.msk.f32.mxu0 %vm1580_vm0, %v1581_v1 }
  0x22   :  { %1391 = vmatpush3.bf16.msra.mxu1 %v1661_v9  ;;  %1294 = vmatprep.mubr.msk.f32.mxu1 %vm1580_vm0, %v1581_v1 }
  0x23   :  { %1392 = vmatprep.subr.bf16.mxu1 %v1579_v0 }
  0x24   :  { %1388 = vmatpush3.bf16.msra.mxu0 %v1674_v14 }
  0x25   :  { %1395 = vmatprep.subr.bf16.mxu0 %v1579_v0 }
  0x26   :  { %1394 = vmatpush3.bf16.msra.mxu1 %v1674_v14 }
  0x27   :  { %1401 = vmatprep.subr.bf16.mxu1 %v1579_v0 }
  0xf2   :  { %v128_v19 = vpop.f32.mrb[0].mxu0 }
  0xf3   :  { %v209_v20 = vpop.f32.mrb[0].mxu1  ;;  %v1263_v21 = vpop.f32.mrb[1].mxu0  ;;  %v1711_v28 = vadd.f32 %v128_v19, %v57_v27 }
  0xf4   :  { %v210_v22 = vadd.f32 %v209_v20, %v1703_v18  ;;  %v1274_v23 = vpop.f32.mrb[1].mxu1 }
  0xf6   :  { %221 = vrot.lane.b32.xlu0 %v210_v22, %s1582_s12  ;;  %v213_v29 = vadd.f32 %v210_v22, %v1711_v28 }
  0xf8   :  { %v1182_v30 = vmul.f32 -1.442695, %v213_v29 }
  0xfa   :  { %1448 = vpow2.f32 %v1182_v30 }
 0x104   :  { %v1449_v31 = vpop.eup %1448 }
 0x105   :  { %v217_v32 = vadd.f32 1.0, %v1449_v31 }
 0x107   :  { %1450 = vrcp.f32 %v217_v32 }
 0x111   :  { %v1451_v33 = vpop.eup %1450 }
 0x112   :  { %v231_v41 = vsub.f32 1.0, %v1451_v33 }
 0x168   :  { %v222_v34 = vpop.permute.xlu0 %221 }
 0x169   :  { %v224_v35 = vmul.f32 %v1451_v33, %v222_v34 }
 0x16b   :  { %226 = vrot.lane.b32.xlu0 %v224_v35, %s1582_s12 }
 0x1dd   :  { %v227_v36 = vpop.permute.xlu0 %226 }
 0x1de   :  { %v229_v37 = vadd.f32 %v227_v36, %v1711_v28 }
 0x1e0   :  { %1452 = vtanh.f32 %v229_v37 }
 0x1ea   :  { %v1453_v38 = vpop.eup %1452 }
 0x1eb   :  { %233 = vrot.lane.b32.xlu1 %v1453_v38, %s1583_s5 }
 0x1ef   :  { %241 = vrot.lane.b32.xlu1 %v240_v39, %s1584_s13 }
 0x25d   :  { %v234_v40 = vpop.permute.xlu1 %233 }
 0x25e   :  { %v236_v43 = vmul.f32 %v234_v40, %v231_v41 }
 0x261   :  { %v242_v42 = vpop.permute.xlu1 %241 }
 0x262   :  { %v244_v44 = vmul.f32 %v1451_v33, %v242_v42 }
 0x264   :  { %v1718_v45 = vadd.f32 %v244_v44, %v236_v43 }
 0x266   :  { %247 = vrot.lane.b32.xlu0 %v1718_v45, %s1583_s5  ;;  %v347_v62 = vrot.slane %v1718_v45, 7 }
 0x2d8   :  { %v248_v46 = vpop.permute.xlu0 %247 }
 0x2d9   :  { %1284 = vmatmul.mubr.msk.f32.vlgmr.msra.gmra.mrb[2].mxu0 %vm58_vm1, %v248_v46 }
 0x2da   :  { %1397 = vmatpush3.bf16.msra.mxu0 %v1661_v9  ;;  %1305 = vmatprep.mubr.msk.f32.mxu0 %vm1580_vm0, %v1581_v1 }
 0x2db   :  { %1398 = vmatprep.subr.bf16.mxu0 %v1579_v0 }
 0x2de   :  { %1400 = vmatpush3.bf16.msra.mxu0 %v1674_v14 }
 0x2df   :  { %1407 = vmatprep.subr.bf16.mxu0 %v1579_v0 }
 0x3ac   :  { %v317_v47 = vpop.f32.mrb[2].mxu0 }
 0x3ad   :  { %v318_v48 = vadd.f32 %v317_v47, %v1703_v18  ;;  %v1285_v49 = vpop.f32.mrb[3].mxu0 }
 0x3af   :  { %v322_v50 = vrot.slane %v318_v48, 7 }
 0x3b1   :  { %331 = vrot.lane.b32.xlu1 %v322_v50, %s1582_s12  ;;  %v324_v51 = vadd.f32 %v322_v50, %v1711_v28 }
 0x3b3   :  { %v1184_v52 = vmul.f32 -1.442695, %v324_v51 }
 0x3b5   :  { %1454 = vpow2.f32 %v1184_v52 }
 0x3bf   :  { %v1455_v53 = vpop.eup %1454 }
 0x3c0   :  { %v328_v54 = vadd.f32 1.0, %v1455_v53 }
 0x3c2   :  { %1456 = vrcp.f32 %v328_v54 }
 0x3cc   :  { %v1457_v55 = vpop.eup %1456 }
 0x3cd   :  { %v341_v61 = vsub.f32 1.0, %v1457_v55  ;;  %v349_v2 = vmul.f32 %v1457_v55, %v347_v62 }
 0x423   :  { %v332_v56 = vpop.permute.xlu1 %331 }
 0x424   :  { %v334_v57 = vmul.f32 %v1457_v55, %v332_v56 }
 0x426   :  { %336 = vrot.lane.b32.xlu0 %v334_v57, %s1582_s12 }
 0x498   :  { %v337_v58 = vpop.permute.xlu0 %336 }
 0x499   :  { %v339_v59 = vadd.f32 %v337_v58, %v1711_v28 }
 0x49b   :  { %1458 = vtanh.f32 %v339_v59 }
 0x4a5   :  { %v1459_v60 = vpop.eup %1458 }
 0x4a6   :  { %343 = vrot.lane.b32.xlu1 %v1459_v60, %s1583_s5 }
 0x518   :  { %v344_v63 = vpop.permute.xlu1 %343 }
 0x519   :  { %v346_v3 = vmul.f32 %v344_v63, %v341_v61 }
 0x51b   :  { %v350_v4 = vadd.f32 %v349_v2, %v346_v3 }
 0x51d   :  { %v352_v5 = vrot.slane %v350_v4, 1  ;;  %v453_v27 = vrot.slane %v350_v4, 7  ;;  %v994_v33 = vsel %vm993_vm2, %v1718_v45, %v350_v4 }
 0x51f   :  { %353 = vrot.lane.b32.xlu0 %v352_v5, %s1583_s5 }
 0x591   :  { %v354_v6 = vpop.permute.xlu0 %353 }
 0x592   :  { %1295 = vmatmul.mubr.msk.f32.vlgmr.msra.gmra.mrb[2].mxu1 %vm58_vm1, %v354_v6 }
 0x593   :  { %1403 = vmatpush3.bf16.msra.mxu1 %v1661_v9  ;;  %1316 = vmatprep.mubr.msk.f32.mxu1 %vm1580_vm0, %v1581_v1 }
 0x594   :  { %1404 = vmatprep.subr.bf16.mxu1 %v1579_v0 }
 0x597   :  { %1406 = vmatpush3.bf16.msra.mxu1 %v1674_v14 }
 0x598   :  { %1413 = vmatprep.subr.bf16.mxu1 %v1579_v0 }
 0x665   :  { %v423_v7 = vpop.f32.mrb[2].mxu1 }
 0x666   :  { %v424_v8 = vadd.f32 %v423_v7, %v1703_v18  ;;  %v1296_v10 = vpop.f32.mrb[3].mxu1 }
 0x668   :  { %v428_v11 = vrot.slane %v424_v8, 6 }
 0x66a   :  { %437 = vrot.lane.b32.xlu1 %v428_v11, %s1582_s12  ;;  %v430_v12 = vadd.f32 %v428_v11, %v1711_v28 }
 0x66c   :  { %v1186_v13 = vmul.f32 -1.442695, %v430_v12 }
 0x66e   :  { %1460 = vpow2.f32 %v1186_v13 }
 0x678   :  { %v1461_v15 = vpop.eup %1460 }
 0x679   :  { %v434_v16 = vadd.f32 1.0, %v1461_v15 }
 0x67b   :  { %1462 = vrcp.f32 %v434_v16 }
 0x685   :  { %v1463_v19 = vpop.eup %1462 }
 0x686   :  { %v447_v26 = vsub.f32 1.0, %v1463_v19  ;;  %v455_v30 = vmul.f32 %v1463_v19, %v453_v27 }
 0x6dc   :  { %v438_v20 = vpop.permute.xlu1 %437 }
 0x6dd   :  { %v440_v21 = vmul.f32 %v1463_v19, %v438_v20 }
 0x6df   :  { %442 = vrot.lane.b32.xlu0 %v440_v21, %s1582_s12 }
 0x751   :  { %v443_v22 = vpop.permute.xlu0 %442 }
 0x752   :  { %v445_v23 = vadd.f32 %v443_v22, %v1711_v28 }
 0x754   :  { %1464 = vtanh.f32 %v445_v23 }
 0x75e   :  { %v1465_v24 = vpop.eup %1464 }
 0x75f   :  { %449 = vrot.lane.b32.xlu1 %v1465_v24, %s1583_s5 }
 0x7d1   :  { %v450_v29 = vpop.permute.xlu1 %449 }
 0x7d2   :  { %v452_v31 = vmul.f32 %v450_v29, %v447_v26 }
 0x7d4   :  { %v456_v32 = vadd.f32 %v455_v30, %v452_v31 }
 0x7d6   :  { %v996_v34 = vsel %vm995_vm3, %v994_v33, %v456_v32  ;;  %v458_v35 = vrot.slane %v456_v32, 2  ;;  %v559_v52 = vrot.slane %v456_v32, 7 }
 0x7d8   :  { %459 = vrot.lane.b32.xlu0 %v458_v35, %s1583_s5 }
 0x84a   :  { %v460_v36 = vpop.permute.xlu0 %459 }
 0x84b   :  { %1306 = vmatmul.mubr.msk.f32.vlgmr.msra.gmra.mrb[4].mxu0 %vm58_vm1, %v460_v36 }
 0x84c   :  { %1409 = vmatpush3.bf16.msra.mxu0 %v1661_v9  ;;  %1327 = vmatprep.mubr.msk.f32.mxu0 %vm1580_vm0, %v1581_v1 }
 0x84d   :  { %1410 = vmatprep.subr.bf16.mxu0 %v1579_v0 }
 0x850   :  { %1412 = vmatpush3.bf16.msra.mxu0 %v1674_v14 }
 0x851   :  { %1419 = vmatprep.subr.bf16.mxu0 %v1579_v0 }
 0x91e   :  { %v529_v37 = vpop.f32.mrb[4].mxu0 }
 0x91f   :  { %v530_v38 = vadd.f32 %v529_v37, %v1703_v18  ;;  %v1307_v39 = vpop.f32.mrb[5].mxu0 }
 0x921   :  { %v534_v40 = vrot.slane %v530_v38, 5 }
 0x923   :  { %543 = vrot.lane.b32.xlu1 %v534_v40, %s1582_s12  ;;  %v536_v41 = vadd.f32 %v534_v40, %v1711_v28 }
 0x925   :  { %v1188_v42 = vmul.f32 -1.442695, %v536_v41 }
 0x927   :  { %1466 = vpow2.f32 %v1188_v42 }
 0x931   :  { %v1467_v43 = vpop.eup %1466 }
 0x932   :  { %v540_v44 = vadd.f32 1.0, %v1467_v43 }
 0x934   :  { %1468 = vrcp.f32 %v540_v44 }
 0x93e   :  { %v1469_v45 = vpop.eup %1468 }
 0x93f   :  { %v553_v51 = vsub.f32 1.0, %v1469_v45  ;;  %v561_v54 = vmul.f32 %v1469_v45, %v559_v52 }
 0x995   :  { %v544_v46 = vpop.permute.xlu1 %543 }
 0x996   :  { %v546_v47 = vmul.f32 %v1469_v45, %v544_v46 }
 0x998   :  { %548 = vrot.lane.b32.xlu0 %v546_v47, %s1582_s12 }
 0xa0a   :  { %v549_v48 = vpop.permute.xlu0 %548 }
 0xa0b   :  { %v551_v49 = vadd.f32 %v549_v48, %v1711_v28 }
 0xa0d   :  { %1470 = vtanh.f32 %v551_v49 }
 0xa17   :  { %v1471_v50 = vpop.eup %1470 }
 0xa18   :  { %555 = vrot.lane.b32.xlu1 %v1471_v50, %s1583_s5 }
 0xa8a   :  { %v556_v53 = vpop.permute.xlu1 %555 }
 0xa8b   :  { %v558_v55 = vmul.f32 %v556_v53, %v553_v51 }
 0xa8d   :  { %v562_v56 = vadd.f32 %v561_v54, %v558_v55 }
 0xa8f   :  { %v998_v57 = vsel %vm997_vm4, %v996_v34, %v562_v56  ;;  %v564_v58 = vrot.slane %v562_v56, 3  ;;  %v665_v15 = vrot.slane %v562_v56, 7 }
 0xa91   :  { %565 = vrot.lane.b32.xlu0 %v564_v58, %s1583_s5 }
 0xb03   :  { %v566_v59 = vpop.permute.xlu0 %565 }
 0xb04   :  { %1317 = vmatmul.mubr.msk.f32.vlgmr.msra.gmra.mrb[4].mxu1 %vm58_vm1, %v566_v59 }
 0xb05   :  { %1415 = vmatpush3.bf16.msra.mxu1 %v1661_v9  ;;  %1338 = vmatprep.mubr.msk.f32.mxu1 %vm1580_vm0, %v1581_v1 }
 0xb06   :  { %1416 = vmatprep.subr.bf16.mxu1 %v1579_v0 }
 0xb09   :  { %1418 = vmatpush3.bf16.msra.mxu1 %v1674_v14 }
 0xb0a   :  { %1425 = vmatprep.subr.bf16.mxu1 %v1579_v0 }
 0xbd7   :  { %v635_v60 = vpop.f32.mrb[4].mxu1 }
 0xbd8   :  { %v636_v61 = vadd.f32 %v635_v60, %v1703_v18  ;;  %v1318_v62 = vpop.f32.mrb[5].mxu1 }
 0xbda   :  { %v640_v63 = vrot.slane %v636_v61, 4 }
 0xbdc   :  { %649 = vrot.lane.b32.xlu1 %v640_v63, %s1582_s12  ;;  %v642_v2 = vadd.f32 %v640_v63, %v1711_v28 }
 0xbde   :  { %v1190_v3 = vmul.f32 -1.442695, %v642_v2 }
 0xbe0   :  { %1472 = vpow2.f32 %v1190_v3 }
 0xbea   :  { %v1473_v4 = vpop.eup %1472 }
 0xbeb   :  { %v646_v5 = vadd.f32 1.0, %v1473_v4 }
 0xbed   :  { %1474 = vrcp.f32 %v646_v5 }
 0xbf7   :  { %v1475_v6 = vpop.eup %1474 }
 0xbf8   :  { %v659_v13 = vsub.f32 1.0, %v1475_v6  ;;  %v667_v19 = vmul.f32 %v1475_v6, %v665_v15 }
 0xc4e   :  { %v650_v7 = vpop.permute.xlu1 %649 }
 0xc4f   :  { %v652_v8 = vmul.f32 %v1475_v6, %v650_v7 }
 0xc51   :  { %654 = vrot.lane.b32.xlu0 %v652_v8, %s1582_s12  ;;  %v1010_v8 = vsub.s32 2, %v1707_v25 }
 0xcc3   :  { %v655_v10 = vpop.permute.xlu0 %654 }
 0xcc4   :  { %v657_v11 = vadd.f32 %v655_v10, %v1711_v28  ;;  %v1011_v10 = vrot.slane %v1700_v17, %v1010_v8 }
 0xcc6   :  { %1476 = vtanh.f32 %v657_v11  ;;  %v1007_v11 = vld [vmem:[%s1885_s2] sm:$0xff] }
 0xcd0   :  { %v1477_v12 = vpop.eup %1476 }
 0xcd1   :  { %661 = vrot.lane.b32.xlu1 %v1477_v12, %s1583_s5  ;;  %v1012_v12 = vmul.f32 %v1011_v10, %v1007_v11 }
 0xd43   :  { %v662_v16 = vpop.permute.xlu1 %661 }
 0xd44   :  { %v664_v20 = vmul.f32 %v662_v16, %v659_v13  ;;  %v1013_v13 = vsel %vm58_vm1, %v1012_v12, 0.0 }
 0xd46   :  { %v668_v21 = vadd.f32 %v667_v19, %v664_v20 }
 0xd48   :  { %v1000_v22 = vsel %vm999_vm5, %v998_v57, %v668_v21  ;;  %v670_v23 = vrot.slane %v668_v21, 4  ;;  %v771_v40 = vrot.slane %v668_v21, 7 }
 0xd4a   :  { %671 = vrot.lane.b32.xlu0 %v670_v23, %s1583_s5 }
 0xdbc   :  { %v672_v24 = vpop.permute.xlu0 %671 }
 0xdbd   :  { %1328 = vmatmul.mubr.msk.f32.vlgmr.msra.gmra.mrb[6].mxu0 %vm58_vm1, %v672_v24 }
 0xdbe   :  { %1421 = vmatpush3.bf16.msra.mxu0 %v1661_v9  ;;  %1349 = vmatprep.mubr.msk.f32.mxu0 %vm1580_vm0, %v1581_v1 }
 0xdbf   :  { %1422 = vmatprep.subr.bf16.mxu0 %v1579_v0 }
 0xdc2   :  { %1424 = vmatpush3.bf16.msra.mxu0 %v1674_v14 }
 0xe90   :  { %v741_v26 = vpop.f32.mrb[6].mxu0 }
 0xe91   :  { %v742_v27 = vadd.f32 %v741_v26, %v1703_v18  ;;  %v1329_v29 = vpop.f32.mrb[7].mxu0 }
 0xe93   :  { %v746_v30 = vrot.slane %v742_v27, 3 }
 0xe95   :  { %755 = vrot.lane.b32.xlu1 %v746_v30, %s1582_s12  ;;  %v748_v31 = vadd.f32 %v746_v30, %v1711_v28  ;;  %v1051_v30 = vld [vmem:[%s1889_s6 + $0x8] sm:$0xff] }
 0xe97   :  { %v1192_v32 = vmul.f32 -1.442695, %v748_v31  ;;  %v1052_v31 = vld [vmem:[%s1889_s6 + $0x10] sm:$0xff] }
 0xe99   :  { %1478 = vpow2.f32 %v1192_v32 }
 0xea3   :  { %v1479_v33 = vpop.eup %1478 }
 0xea4   :  { %v752_v9 = vadd.f32 1.0, %v1479_v33  ;;  %v1053_v33 = vld [vmem:[%s1889_s6 + $0x18] sm:$0xff] }
 0xea6   :  { %1480 = vrcp.f32 %v752_v9 }
 0xeb0   :  { %v1481_v34 = vpop.eup %1480 }
 0xeb1   :  { %v765_v39 = vsub.f32 1.0, %v1481_v34  ;;  %v773_v42 = vmul.f32 %v1481_v34, %v771_v40 }
 0xf07   :  { %v756_v35 = vpop.permute.xlu1 %755 }
 0xf08   :  { %v758_v36 = vmul.f32 %v1481_v34, %v756_v35  ;;  %v1054_v34 = vld [vmem:[%s1889_s6 + $0x20] sm:$0xff]  ;;  %v1055_v35 = vld [vmem:[%s1889_s6 + $0x28] sm:$0xff] }
 0xf0a   :  { %760 = vrot.lane.b32.xlu0 %v758_v36, %s1582_s12  ;;  %v1432_v36 = vpack.c.bf16 %v1055_v35, %v1054_v34 }
 0xf7c   :  { %v761_v14 = vpop.permute.xlu0 %760 }
 0xf7d   :  { %v763_v37 = vadd.f32 %v761_v14, %v1711_v28 }
 0xf7f   :  { %1482 = vtanh.f32 %v763_v37 }
 0xf89   :  { %v1483_v38 = vpop.eup %1482 }
 0xf8a   :  { %767 = vrot.lane.b32.xlu1 %v1483_v38, %s1583_s5 }
 0xffc   :  { %v768_v41 = vpop.permute.xlu1 %767 }
 0xffd   :  { %v770_v43 = vmul.f32 %v768_v41, %v765_v39 }
 0xfff   :  { %v774_v44 = vadd.f32 %v773_v42, %v770_v43 }
0x1001   :  { %v776_v45 = vrot.slane %v774_v44, 5  ;;  %v1002_v46 = vsel %vm1001_vm6, %v1000_v22, %v774_v44  ;;  %v877_v62 = vrot.slane %v774_v44, 7 }
0x1003   :  { %777 = vrot.lane.b32.xlu0 %v776_v45, %s1583_s5 }
0x1075   :  { %v778_v47 = vpop.permute.xlu0 %777 }
0x1076   :  { %1339 = vmatmul.mubr.msk.f32.vlgmr.msra.gmra.mrb[6].mxu1 %vm58_vm1, %v778_v47 }
0x1077   :  { %1368 = vmatprep.mubr.msk.f32.mxu1 %vm1580_vm0, %v1581_v1 }
0x1149   :  { %v847_v48 = vpop.f32.mrb[6].mxu1 }
0x114a   :  { %v848_v49 = vadd.f32 %v847_v48, %v1703_v18  ;;  %v1340_v50 = vpop.f32.mrb[7].mxu1 }
0x114c   :  { %v852_v51 = vrot.slane %v848_v49, 2 }
0x114e   :  { %861 = vrot.lane.b32.xlu1 %v852_v51, %s1582_s12  ;;  %v854_v52 = vadd.f32 %v852_v51, %v1711_v28 }
0x1150   :  { %v1194_v53 = vmul.f32 -1.442695, %v854_v52 }
0x1152   :  { %1484 = vpow2.f32 %v1194_v53 }
0x115c   :  { %v1485_v54 = vpop.eup %1484 }
0x115d   :  { %v858_v55 = vadd.f32 1.0, %v1485_v54 }
0x115f   :  { %1486 = vrcp.f32 %v858_v55 }
0x1169   :  { %v1487_v56 = vpop.eup %1486 }
0x116a   :  { %v871_v61 = vsub.f32 1.0, %v1487_v56  ;;  %v879_v2 = vmul.f32 %v1487_v56, %v877_v62 }
0x11c0   :  { %v862_v57 = vpop.permute.xlu1 %861 }
0x11c1   :  { %v864_v58 = vmul.f32 %v1487_v56, %v862_v57  ;;  %v1056_v57 = vld [vmem:[%s1889_s6 + $0x30] sm:$0xff] }
0x11c3   :  { %866 = vrot.lane.b32.xlu0 %v864_v58, %s1582_s12  ;;  %v1057_v58 = vld [vmem:[%s1889_s6 + $0x38] sm:$0xff] }
0x1235   :  { %v867_v1 = vpop.permute.xlu0 %866 }
0x1236   :  { %v869_v59 = vadd.f32 %v867_v1, %v1711_v28  ;;  %v1435_v1 = vpack.c.bf16 %v1057_v58, %v1056_v57 }
0x1238   :  { %1488 = vtanh.f32 %v869_v59 }
0x1242   :  { %v1489_v60 = vpop.eup %1488 }
0x1243   :  { %873 = vrot.lane.b32.xlu1 %v1489_v60, %s1583_s5 }
0x12b5   :  { %v874_v63 = vpop.permute.xlu1 %873 }
0x12b6   :  { %v876_v3 = vmul.f32 %v874_v63, %v871_v61 }
0x12b8   :  { %v1802_v4 = vadd.f32 %v879_v2, %v876_v3 }
0x12ba   :  { %v882_v5 = vrot.slane %v1802_v4, 6  ;;  %v1806_v6 = vsel %vm1003_vm7, %v1002_v46, %v1802_v4  ;;  %v983_v61 = vrot.slane %v1802_v4, 7  ;;  %v1197_v4 = vld [vmem:[%s1890_s7] ss:$0 sm:$0xff]  ;;  %s1526_s7 = scalar_lea.vmem %s1168_s4, 16 }
0x12bb   :  { %p1527_p8 = scmp.ne.s32.totalorder %s1168_s4, %s1526_s7  ;;  %p1532_p10 = scmp.lt.s32.totalorder %s1530_s11, %s1526_s7 }
0x12bc   :  { %883 = vrot.lane.b32.xlu0 %v882_v5, %s1583_s5 }
0x12bd   :  { %p1533_p11 = por %p1532_p10, %p1531_p9 }
0x12bf   :  { %p1534_p12 = pnand %p1533_p11, %p1527_p8 }
0x12db   :  { %1014 = vadd.xlane.f32.xlu0 %v1013_v13 }
0x132e   :  { %v884_v7 = vpop.permute.xlu0 %883 }
0x132f   :  { %1350 = vmatmul.mubr.msk.f32.vlgmr.msra.gmra.mrb[8].mxu0 %vm58_vm1, %v884_v7 }
0x1368   :  { %v1015_v14 = vpop.xlane.xlu0 %1014 }
0x1369   :  { %v1016_v37 = vrot.slane %v1015_v14, 4 }
0x136b   :  { %v1017_v38 = vmax.f32 %v1015_v14, %v1016_v37 }
0x136d   :  { %v1018_v39 = vrot.slane %v1017_v38, 2 }
0x136f   :  { %v1019_v40 = vmax.f32 %v1017_v38, %v1018_v39 }
0x1371   :  { %v1020_v41 = vrot.slane %v1019_v40, 1 }
0x1373   :  { %v1021_v42 = vmax.f32 %v1019_v40, %v1020_v41 }
0x1375   :  { %v1022_v43 = vsub.f32 %v1015_v14, %v1021_v42 }
0x1377   :  { %v1023_v44 = vmul.f32 1.442695, %v1022_v43 }
0x1402   :  { %v953_v15 = vpop.f32.mrb[8].mxu0 }
0x1403   :  { %v954_v16 = vadd.f32 %v953_v15, %v1703_v18  ;;  %v1351_v19 = vpop.f32.mrb[9].mxu0  ;;  %v1050_v18 = vld [vmem:[%s1889_s6] sm:$0xff] }
0x1404   :  { %v1426_v32 = vpack.c.bf16 %v1051_v30, %v1050_v18 }
0x1405   :  { %v958_v20 = vrot.slane %v954_v16, 1 }
0x1406   :  { %1427 = vmatpush3.bf16.msra.mxu1 %v1426_v32 }
0x1407   :  { %967 = vrot.lane.b32.xlu1 %v958_v20, %s1582_s12  ;;  %v960_v21 = vadd.f32 %v958_v20, %v1711_v28  ;;  %1428 = vmatprep.subr.bf16.mxu1 %v1579_v0 }
0x1409   :  { %v1196_v25 = vmul.f32 -1.442695, %v960_v21 }
0x140b   :  { %1490 = vpow2.f32 %v1196_v25 }
0x1415   :  { %v1491_v17 = vpop.eup %1490 }
0x1416   :  { %v964_v22 = vadd.f32 1.0, %v1491_v17 }
0x1418   :  { %1492 = vrcp.f32 %v964_v22 }
0x1422   :  { %v1493_v23 = vpop.eup %1492 }
0x1423   :  { %v977_v60 = vsub.f32 1.0, %v1493_v23  ;;  %v985_v2 = vmul.f32 %v1493_v23, %v983_v61 }
0x1479   :  { %v968_v24 = vpop.permute.xlu1 %967 }
0x147a   :  { %v970_v26 = vmul.f32 %v1493_v23, %v968_v24 }
0x147c   :  { %972 = vrot.lane.b32.xlu1 %v970_v26, %s1582_s12 }
0x14ee   :  { %v973_v27 = vpop.permute.xlu1 %972 }
0x14ef   :  { %v975_v29 = vadd.f32 %v973_v27, %v1711_v28  ;;  %v1429_v28 = vpack.c.bf16 %v1053_v33, %v1052_v31 }
0x14f1   :  { %1494 = vtanh.f32 %v975_v29  ;;  %1430 = vmatpush3.bf16.msra.mxu1 %v1429_v28 }
0x14f2   :  { %1431 = vmatprep.subr.bf16.mxu1 %v1579_v0  ;;  %1496 = vpow2.f32 %v1023_v44 }
0x14f5   :  { %1433 = vmatpush3.bf16.msra.mxu1 %v1432_v36 }
0x14f6   :  { %1434 = vmatprep.subr.bf16.mxu1 %v1579_v0 }
0x14f9   :  { %1436 = vmatpush3.bf16.msra.mxu1 %v1435_v1 }
0x14fb   :  { %v1495_v9 = vpop.eup %1494 }
0x14fc   :  { %979 = vrot.lane.b32.xlu1 %v1495_v9, %s1583_s5  ;;  %v1497_v45 = vpop.eup %1496 }
0x14fd   :  { %v1025_v46 = vrot.slane %v1497_v45, 4 }
0x14ff   :  { %v1026_v47 = vadd.f32 %v1497_v45, %v1025_v46 }
0x1501   :  { %v1027_v48 = vrot.slane %v1026_v47, 2 }
0x1503   :  { %v1028_v49 = vadd.f32 %v1027_v48, %v1026_v47 }
0x1505   :  { %v1029_v50 = vrot.slane %v1028_v49, 1 }
0x1507   :  { %v1030_v51 = vadd.f32 %v1029_v50, %v1028_v49 }
0x1509   :  { %1498 = vrcp.f32 %v1030_v51 }
0x1513   :  { %v1499_v52 = vpop.eup %1498 }
0x1514   :  { %v1032_v53 = vmul.f32 %v1499_v52, %v1497_v45 }
0x1516   :  { %v1033_v0 = vmul.f32 %v1032_v53, %v1007_v11 }
0x1518   :  { %v1034_v54 = vsel %vm58_vm1, %v1033_v0, 0.0 }
0x1519   :  { %v1035_v55 = vrot.slane %v1034_v54, 4 }
0x151b   :  { %v1036_v56 = vadd.f32 %v1035_v55, %v1034_v54 }
0x151d   :  { %v1037_v59 = vrot.slane %v1036_v56, 2 }
0x151f   :  { %v1038_v63 = vadd.f32 %v1037_v59, %v1036_v56 }
0x1521   :  { %v1039_v7 = vrot.slane %v1038_v63, 1 }
0x1523   :  { %v1040_v10 = vadd.f32 %v1039_v7, %v1038_v63 }
0x156e   :  { %v980_v62 = vpop.permute.xlu1 %979 }
0x156f   :  { %v982_v3 = vmul.f32 %v980_v62, %v977_v60 }
0x1571   :  { %v986_v5 = vadd.f32 %v985_v2, %v982_v3 }
0x1573   :  { %v1006_v8 = vsel %vm1005_vm8, %v1806_v6, %v986_v5 }
0x1574   :  { %1042 = vrot.lane.b32.xlu1 %v1006_v8, %s1583_s5 }
0x1578   :  { %1046 = vrot.lane.b32.xlu1 %v1040_v10, %s1584_s13 }
0x15e6   :  { %v1043_v11 = vpop.permute.xlu1 %1042 }
0x15ea   :  { %v1047_v12 = vpop.permute.xlu1 %1046 }
0x15eb   :  { %v1049_v13 = vsel %vm58_vm1, %v1043_v11, %v1047_v12 }
0x15ec   :  { %1369 = vmatmul.mubr.msk.f32.vlgmr.msra.gmra.mrb[8].mxu1 %vm1065_vm9, %v1049_v13 }
0x16bf   :  { %v1135_v15 = vpop.f32.mrb[8].mxu1 }
0x16c0   :  { %v1136_v16 = vadd.f32 %v1197_v4, %v1135_v15  ;;  %v1370_v19 = vpop.f32.mrb[9].mxu1 }
0x16c2   :  { %1139 = vmax.xlane.f32.xlu1 %v1136_v16 }
0x174f   :  { %v1140_v6 = vpop.xlane.xlu1 %1139 }
0x1750   :  { %v1141_v20 = vsub.f32 %v1136_v16, %v1140_v6 }
0x1752   :  { %v1142_v21 = vmul.f32 1.442695, %v1141_v20 }
0x1754   :  { %1500 = vpow2.f32 %v1142_v21 }
0x175e   :  { %v1501_v25 = vpop.eup %1500 }
0x175f   :  { %1144 = vadd.xlane.f32.xlu0 %v1501_v25 }
0x1775   :  { %988 = vrot.lane.b32.xlu0 %v986_v5, %s1583_s5 }
0x17ec   :  { %v1145_v17 = vpop.xlane.xlu0 %1144 }
0x17ed   :  { %1502 = vlog2.f32 %v1145_v17 }
0x17f0   :  { %v989_v22 = vpop.permute.xlu0 %988 }
0x17f1   :  { %992 = vst.msk [vmem:[#allocation6 - $0x7] sm:$0x80] %vm991_vm10, %v989_v22 }
0x17f2   :  { %1537 = shalt.err (!%p1534_p12)
}
0x17f3   :  { %s1538_s12 = scalar_lea.hbm %s1892_s9, 16 }
0x17f4   :  { %p1539_p13 = scmp.ne.s32.totalorder %s1892_s9, %s1538_s12  ;;  %p1542_p0 = scmp.lt.u32.totalorder %s1538_s12, %s1892_s9 }
0x17f6   :  { %p1544_p1 = pnand %p1542_p0, %p1539_p13 }
0x17f8   :  { %1547 = shalt.err (!%p1544_p1)
}
0x17f9   :  { %1170 = dma.vmem_to_hbm [thread:$0]  %s1168_s4, 16, %s1892_s9, [#allocation7]   ;;  %v1503_v23 = vpop.eup %1502 }
0x17fa   :  { %v1147_v24 = vmul.f32 0.6931472, %v1503_v23  ;;  %s1586_s17 = smov [#allocation5]  }
0x17fb   :  { %s1157_s18 = sshll.u32 %s1586_s17, 4  ;;  %s1158_s18 = int_to_ptr.vmem [resolvable:$true] %s1157_s18 }
0x17fc   :  { %v1148_v26 = vadd.f32 %v1147_v24, %v1140_v6  ;;  %s1548_s19 = scalar_lea.vmem %s1158_s18, 128  ;;  %p1553_p3 = scmp.lt.s32.totalorder %s1158_s18, %s1158_s18 }
0x17fd   :  { %p1549_p2 = scmp.ne.s32.totalorder %s1158_s18, %s1548_s19  ;;  %p1554_p4 = scmp.lt.s32.totalorder %s1548_s19, %s1548_s19 }
0x17fe   :  { %v1149_v27 = vsub.f32 %v1136_v16, %v1148_v26 }
0x17ff   :  { %p1555_p5 = por %p1554_p4, %p1553_p3 }
0x1800   :  { %1150 = vst [vmem:[#allocation5] sm:$0xff] %v1149_v27 }
0x1801   :  { %p1556_p6 = pnand %p1555_p5, %p1549_p2 }
0x1803   :  { %1559 = shalt.err (!%p1556_p6)
}
0x1804   :  { %s1560_s22 = scalar_lea.hbm %s1891_s8, 128 }
0x1805   :  { %p1561_p7 = scmp.ne.s32.totalorder %s1891_s8, %s1560_s22  ;;  %p1564_p8 = scmp.lt.u32.totalorder %s1560_s22, %s1891_s8 }
0x1807   :  { %p1566_p9 = pnand %p1564_p8, %p1561_p7 }
0x1809   :  { %1569 = shalt.err (!%p1566_p9)
}
0x180a   :  { %1160 = dma.vmem_to_hbm [thread:$0]  %s1158_s18, 128, %s1891_s8, [#allocation4]  }
0x180b   :  { %1572 = dma.done.wait [#allocation4], 128  }
0x180c   :  { %1573 = vsyncadd [#allocation4], 4294967168 }
0x180d   :  { %1574 = dma.done.wait [#allocation7], 16  }
0x180e   :  { %1575 = vsyncadd [#allocation7], 4294967280 }
0x180f   :  { %1177 = vsyncpa [#allocation3], 1 }
0x1810   :  { %1178 = vsyncpa [#allocation4], 1 }
0x1811   :  { %1179 = vsyncpa [#allocation7], 1 }

</bundles_post_ra>
